<compile_context>
chip_gen: v5e
topology: v5e:2x2
jax: 0.10.0
libtpu: 0.0.40
codegen_flags: <defaults>
</compile_context>

<pallas_src>
import functools

import jax
import jax.numpy as jnp
from jax import lax
from jax.experimental import pallas as pl
from jax.experimental.pallas import tpu as pltpu

N_EMBD = 384        # matches the module's n_embd
HEAD_SIZE = 32      # head_size passed to Head(head_size)
BLOCK_SIZE = 256    # tril buffer size in the module (only tril[:T,:T] is used)


# --------------------------------------------------------------------------- #
# Kernel
# --------------------------------------------------------------------------- #
def _head_kernel(x_ref, wqkv_ref, o_ref, *, head_size):
    # x_ref block:    (Bb, T, C) bfloat16
    # wqkv_ref block: (C, 3H)    bfloat16   (packed [Wk | Wq | Wv])
    # o_ref block:    (Bb, H, T) float32    (lane-dense transposed output)
    bb, T, C = x_ref.shape
    H = head_size

    # ---- fused QKV projection (one MXU pass, bf16 operands, f32 accumulate) --
    x2d = x_ref[...].reshape(bb * T, C)                        # already bf16
    qkv = jnp.dot(x2d, wqkv_ref[...],
                  preferred_element_type=jnp.float32)          # (Bb*T, 3H) f32
    qkv = qkv.reshape(bb, T, 3 * H)
    k = qkv[:, :, 0:H]                                         # (Bb, T, H)
    q = qkv[:, :, H:2 * H] * (H ** -0.5)                       # scale folded in
    v = qkv[:, :, 2 * H:3 * H]

    # ---- scores: contract last dims directly (no explicit k transpose) ------
    s = lax.dot_general(q.astype(jnp.bfloat16), k.astype(jnp.bfloat16),
                        dimension_numbers=(((2,), (2,)), ((0,), (0,))),
                        preferred_element_type=jnp.float32)    # (Bb, T, T) f32

    # Causal mask from a single 2-D compare, broadcast over the batch block.
    # (-inf is safe here: every causal row has its diagonal unmasked.)
    row = lax.broadcasted_iota(jnp.int32, (T, T), 0)
    col = lax.broadcasted_iota(jnp.int32, (T, T), 1)
    s = jnp.where((col <= row)[None, :, :], s, -jnp.inf)

    # ---- numerically stable softmax in f32 ----------------------------------
    s = s - jnp.max(s, axis=-1, keepdims=True)
    p = jnp.exp(s)
    p = p * pl.reciprocal(jnp.sum(p, axis=-1, keepdims=True), approx=True)

    # ---- attention output, computed transposed: out_t[b,h,tq] = sum_k v.p ---
    out_t = lax.dot_general(v.astype(jnp.bfloat16), p.astype(jnp.bfloat16),
                            dimension_numbers=(((1,), (2,)), ((0,), (0,))),
                            preferred_element_type=jnp.float32)  # (Bb, H, T)

    o_ref[...] = out_t.astype(o_ref.dtype)


# --------------------------------------------------------------------------- #
# Block sizing
# --------------------------------------------------------------------------- #
def _device_kind():
    try:
        return jax.devices()[0].device_kind.lower()
    except Exception:  # pragma: no cover - defensive
        return ""


def _estimate_vmem_bytes(bb, T, C, H):
    """Rough per-step VMEM footprint (double-buffered I/O + f32 intermediates)."""
    x_in = 2 * bb * T * C * 2                 # bf16 x block, double-buffered
    w = 2 * C * 3 * H * 2                     # bf16 packed weights
    out = 2 * bb * H * T * 4                  # f32 transposed output block
    inter = (bb * T * T * 14                  # s/p f32 + bf16 p + exp temp
             + bb * T * 3 * H * 6             # qkv f32 + bf16 q/k/v copies
             + T * T * 8)                     # 2-D iota mask temporaries
    return x_in + w + out + inter


def _pick_block_b(B, T, C, H):
    """Batch rows per grid step.

    v5e/v6e (128 MiB VMEM, single TC): take the fattest block that fits.
    v7x (64 MiB VMEM, 2 TCs): cap at 8 rows and prefer an even grid length so
    both cores get work on the 'parallel' axis.
    """
    is_v7 = "v7" in _device_kind()
    max_bb = 8 if is_v7 else 16
    budget = (20 << 20) if is_v7 else (36 << 20)
    candidates = [bb for bb in (16, 8, 4, 2, 1)
                  if bb <= max_bb and B % bb == 0
                  and _estimate_vmem_bytes(bb, T, C, H) <= budget]
    if not candidates:
        candidates = [1]
    if is_v7:
        even = [bb for bb in candidates if (B // bb) % 2 == 0]
        if even:
            candidates = even
    return max(candidates)


def _vmem_limit_bytes():
    # Raise the scoped-VMEM limit above the 16/32 MiB defaults; stay well under
    # v7x's 64 MiB physical VMEM.
    return (40 << 20) if "v7" in _device_kind() else (64 << 20)


# --------------------------------------------------------------------------- #
# Wrapper
# --------------------------------------------------------------------------- #
def pack_qkv_weights(wk, wq, wv):
    """Pack [Wk | Wq | Wv] into one lane-denser (C, 3H) bf16 tile (do once)."""
    return jnp.concatenate([wk, wq, wv], axis=-1).astype(jnp.bfloat16)


@functools.partial(jax.jit, static_argnames=())
def head_forward(x, w_qkv):
    """x: (B, T, C), ideally bf16; w_qkv: (C, 3H) bf16 -> (B, T, H) f32."""
    B, T, C = x.shape
    H = w_qkv.shape[-1] // 3

    if x.dtype != jnp.bfloat16:
        # Best case: the upstream producer already emits bf16 (no extra pass).
        x = x.astype(jnp.bfloat16)
    if w_qkv.dtype != jnp.bfloat16:
        w_qkv = w_qkv.astype(jnp.bfloat16)

    block_b = _pick_block_b(B, T, C, H)
    grid = (B // block_b,)

    kernel = functools.partial(_head_kernel, head_size=H)

    out_t = pl.pallas_call(
        kernel,
        out_shape=jax.ShapeDtypeStruct((B, H, T), jnp.float32),
        grid_spec=pltpu.PrefetchScalarGridSpec(
            num_scalar_prefetch=0,
            grid=grid,
            in_specs=[
                pl.BlockSpec((block_b, T, C), lambda b: (b, 0, 0)),  # x rows
                pl.BlockSpec((C, 3 * H), lambda b: (0, 0)),          # packed W
            ],
            out_specs=pl.BlockSpec((block_b, H, T), lambda b: (b, 0, 0)),
        ),
        compiler_params=pltpu.CompilerParams(
            dimension_semantics=("parallel",),
            vmem_limit_bytes=_vmem_limit_bytes()),
    )(x, w_qkv)

    # Kernel stores lane-dense (B, H, T); return the module's (B, T, H) layout.
    return jnp.swapaxes(out_t, -2, -1)


# --------------------------------------------------------------------------- #
# Pure-JAX reference (mirrors the PyTorch forward, eval mode)
# --------------------------------------------------------------------------- #
def _reference(x, wk, wq, wv):
    k = x @ wk
    q = x @ wq
    v = x @ wv
    wei = (q @ jnp.swapaxes(k, -2, -1)) * (wk.shape[-1] ** -0.5)
    T = x.shape[1]
    mask = jnp.tril(jnp.ones((T, T), dtype=bool))
    wei = jnp.where(mask[None, :, :], wei, -jnp.inf)
    wei = jax.nn.softmax(wei, axis=-1)
    return wei @ v


if __name__ == "__main__":
    key = jax.random.PRNGKey(0)
    kx, kk, kq, kv, kx2 = jax.random.split(key, 5)

    C, H = N_EMBD, HEAD_SIZE

    # Deterministic "nn.Linear(n_embd, head_size, bias=False)"-shaped weights,
    # stored transposed as (C, H) so the kernel computes x @ W.
    init_scale = C ** -0.5
    wk = jax.random.normal(kk, (C, H), dtype=jnp.float32) * init_scale
    wq = jax.random.normal(kq, (C, H), dtype=jnp.float32) * init_scale
    wv = jax.random.normal(kv, (C, H), dtype=jnp.float32) * init_scale
    w_qkv = pack_qkv_weights(wk, wq, wv)   # packed once at "init" time

    # ---- small-shape check (B=2, T=8) ---------------------------------------
    B, T = 2, 8
    x_small = jax.random.normal(kx, (B, T, C), dtype=jnp.float32)
    x_small_bf16 = x_small.astype(jnp.bfloat16)   # upstream supplies bf16

    out = jax.block_until_ready(head_forward(x_small_bf16, w_qkv))
    ref = _reference(x_small_bf16.astype(jnp.float32), wk, wq, wv)
    assert out.shape == (B, T, H)
    # Tolerance loosened vs. pure-f32: bf16 x/weights/q/k/v/p on the MXU
    # (f32 accumulation) plus an approximate EUP reciprocal.
    assert jnp.allclose(out, ref, atol=5e-2, rtol=5e-2), "small-shape mismatch"

    # ---- larger check: exercises T=256 tiling, block_b>1, lane padding ------
    B2, T2 = 16, BLOCK_SIZE
    x_big_bf16 = jax.random.normal(kx2, (B2, T2, C),
                                   dtype=jnp.float32).astype(jnp.bfloat16)
    out2 = jax.block_until_ready(head_forward(x_big_bf16, w_qkv))
    ref2 = _reference(x_big_bf16.astype(jnp.float32), wk, wq, wv)
    assert out2.shape == (B2, T2, H)
    assert jnp.allclose(out2, ref2, atol=5e-2, rtol=5e-2), "large-shape mismatch"

    print("KERNEL_OK")
</pallas_src>

<mosaic_0001>
module attributes {stable_mosaic.version = 11 : i64} {
  func.func @_head_kernel(%arg0: i32, %arg1: memref<2x8x384xbf16, #tpu.memory_space<vmem>>, %arg2: memref<384x96xbf16, #tpu.memory_space<vmem>>, %arg3: memref<2x32x8xf32, #tpu.memory_space<vmem>>) attributes {dimension_semantics = [#tpu.dimension_semantics<parallel>], iteration_bounds = array<i64: 1>, scalar_prefetch = 0 : i64, scratch_operands = 0 : i64, tpu.core_type = #tpu.core_type<tc>, window_params = [{transform_indices = @transform_0, window_bounds = array<i64: 2, 8, 384>}, {pipeline_mode = #tpu.pipeline_mode<synchronous>, transform_indices = @transform_1, window_bounds = array<i64: 384, 96>}, {transform_indices = @transform_2, window_bounds = array<i64: 2, 32, 8>}]} {
    %c0 = arith.constant 0 : index
    %c0_0 = arith.constant 0 : index
    %c0_1 = arith.constant 0 : index
    %0 = vector.load %arg1[%c0, %c0_0, %c0_1] : memref<2x8x384xbf16, #tpu.memory_space<vmem>>, vector<2x8x384xbf16>
    %1 = vector.shape_cast %0 : vector<2x8x384xbf16> to vector<16x384xbf16>
    %c0_2 = arith.constant 0 : index
    %c0_3 = arith.constant 0 : index
    %2 = vector.load %arg2[%c0_2, %c0_3] : memref<384x96xbf16, #tpu.memory_space<vmem>>, vector<384x96xbf16>
    %cst = arith.constant dense<0.000000e+00> : vector<16x96xf32>
    %3 = tpu.matmul %1, %2, %cst {dimension_numbers = #tpu.dot_dimension_numbers<[1], [0], [0], [1], [0, 0, 1, 1], [], []>} : vector<16x384xbf16>, vector<384x96xbf16>, vector<16x96xf32> -> vector<16x96xf32>
    %4 = vector.shape_cast %3 : vector<16x96xf32> to vector<2x8x96xf32>
    %5 = vector.extract_strided_slice %4 {offsets = [0, 0, 0], sizes = [2, 8, 32], strides = [1, 1, 1]} : vector<2x8x96xf32> to vector<2x8x32xf32>
    %6 = vector.extract_strided_slice %4 {offsets = [0, 0, 32], sizes = [2, 8, 32], strides = [1, 1, 1]} : vector<2x8x96xf32> to vector<2x8x32xf32>
    %cst_4 = arith.constant 0.176776692 : f32
    %7 = vector.broadcast %cst_4 : f32 to vector<2x8x32xf32>
    %8 = arith.mulf %6, %7 : vector<2x8x32xf32>
    %9 = vector.extract_strided_slice %4 {offsets = [0, 0, 64], sizes = [2, 8, 32], strides = [1, 1, 1]} : vector<2x8x96xf32> to vector<2x8x32xf32>
    %10 = arith.truncf %8 : vector<2x8x32xf32> to vector<2x8x32xbf16>
    %11 = arith.truncf %5 : vector<2x8x32xf32> to vector<2x8x32xbf16>
    %cst_5 = arith.constant dense<0.000000e+00> : vector<2x8x8xf32>
    %12 = tpu.matmul %10, %11, %cst_5 {dimension_numbers = #tpu.dot_dimension_numbers<[2], [2], [1], [1], [0, 0, 0, 1, 1, 1], [0], [0]>} : vector<2x8x32xbf16>, vector<2x8x32xbf16>, vector<2x8x8xf32> -> vector<2x8x8xf32>
    %13 = tpu.iota {dimensions = array<i32: 0>} : vector<8x8xi32>
    %14 = tpu.iota {dimensions = array<i32: 1>} : vector<8x8xi32>
    %15 = arith.cmpi sle, %14, %13 : vector<8x8xi32>
    %16 = vector.shape_cast %15 : vector<8x8xi1> to vector<1x8x8xi1>
    %cst_6 = arith.constant 0xFF800000 : f32
    %17 = vector.shape_cast %16 : vector<1x8x8xi1> to vector<1x8x8xi1>
    %18 = vector.broadcast %17 : vector<1x8x8xi1> to vector<2x8x8xi1>
    %19 = vector.broadcast %cst_6 : f32 to vector<2x8x8xf32>
    %20 = arith.select %18, %12, %19 : vector<2x8x8xi1>, vector<2x8x8xf32>
    %cst_7 = arith.constant dense<0xFF800000> : vector<2x8xf32>
    %21 = vector.multi_reduction <maximumf>, %20, %cst_7 [2] : vector<2x8x8xf32> to vector<2x8xf32>
    %22 = vector.shape_cast %21 : vector<2x8xf32> to vector<2x8x1xf32>
    %23 = vector.broadcast %22 : vector<2x8x1xf32> to vector<2x8x8xf32>
    %24 = arith.subf %20, %23 : vector<2x8x8xf32>
    %25 = math.exp %24 : vector<2x8x8xf32>
    %cst_8 = arith.constant dense<0.000000e+00> : vector<2x8xf32>
    %26 = vector.multi_reduction <add>, %25, %cst_8 [2] : vector<2x8x8xf32> to vector<2x8xf32>
    %27 = vector.shape_cast %26 : vector<2x8xf32> to vector<2x8x1xf32>
    %28 = tpu.reciprocal %27 {approx = true} : vector<2x8x1xf32> -> vector<2x8x1xf32>
    %29 = vector.broadcast %28 : vector<2x8x1xf32> to vector<2x8x8xf32>
    %30 = arith.mulf %25, %29 : vector<2x8x8xf32>
    %31 = arith.truncf %9 : vector<2x8x32xf32> to vector<2x8x32xbf16>
    %32 = arith.truncf %30 : vector<2x8x8xf32> to vector<2x8x8xbf16>
    %cst_9 = arith.constant dense<0.000000e+00> : vector<2x32x8xf32>
    %33 = tpu.matmul %31, %32, %cst_9 {dimension_numbers = #tpu.dot_dimension_numbers<[1], [2], [2], [1], [0, 0, 0, 2, 1, 1], [0], [0]>} : vector<2x8x32xbf16>, vector<2x8x8xbf16>, vector<2x32x8xf32> -> vector<2x32x8xf32>
    %c0_10 = arith.constant 0 : index
    %c0_11 = arith.constant 0 : index
    %c0_12 = arith.constant 0 : index
    %34 = vector.load %arg3[%c0_10, %c0_11, %c0_12] : memref<2x32x8xf32, #tpu.memory_space<vmem>>, vector<2x32x8xf32>
    tpu.vector_store %arg3[%c0_10, %c0_11, %c0_12], %33 {strides = array<i32>} : memref<2x32x8xf32, #tpu.memory_space<vmem>>, vector<2x32x8xf32>,
    return
  }
  func.func @transform_0(%arg0: i32) -> (i32, i32, i32) {
    %c0_i32 = arith.constant 0 : i32
    %c0_i32_0 = arith.constant 0 : i32
    %c0_i32_1 = arith.constant 0 : i32
    return %arg0, %c0_i32, %c0_i32_0 : i32, i32, i32
  }
  func.func @transform_1(%arg0: i32) -> (i32, i32) {
    %c0_i32 = arith.constant 0 : i32
    %c0_i32_0 = arith.constant 0 : i32
    %c0_i32_1 = arith.constant 0 : i32
    return %c0_i32, %c0_i32_0 : i32, i32
  }
  func.func @transform_2(%arg0: i32) -> (i32, i32, i32) {
    %c0_i32 = arith.constant 0 : i32
    %c0_i32_0 = arith.constant 0 : i32
    %c0_i32_1 = arith.constant 0 : i32
    return %arg0, %c0_i32, %c0_i32_0 : i32, i32, i32
  }
}

</mosaic_0001>

<bundles_post_ra>
// kernel: head_forward.1
= control target key start
LH: loop header
LB: loop body
LE: loop exit
PB: predicated region body
PF: predicated region fallthrough
CT: control target
= control target key end

     0   :  { %vm277_vm0 = vcmask 261120   ;;  %v321_v62 = vlaneseq  ;;  %vm330_vm2 = vcmask 64512   ;;  %s773_s1 = inlined_call_operand.vmem [shape: bf16[384,96], index: 1, kind: input, shape index: {}]   ;;  %s774_s0 = inlined_call_operand.vmem [shape: bf16[2,8,384], index: 0, kind: input, shape index: {}]   ;;  %s775_s2 = inlined_call_operand.vmem [shape: f32[2,32,8], index: 2, kind: output, shape index: {}]  }
   0x1   :  { %v591_v0 = vld [vmem:[%s773_s1 + $0x38] sm:$0xff]  ;;  %v590_v3 = vld [vmem:[%s773_s1 + $0x30] sm:$0xff]  ;;  %v589_v6 = vld [vmem:[%s773_s1 + $0x28] sm:$0xff] }
   0x2   :  { %v599_v1 = vld [vmem:[%s773_s1 + $0x78] sm:$0xff]  ;;  %224 = vmatpush.bf16.msra.mxu0 %v591_v0  ;;  %v598_v4 = vld [vmem:[%s773_s1 + $0x70] sm:$0xff]  ;;  %v597_v7 = vld [vmem:[%s773_s1 + $0x68] sm:$0xff]  ;;  %v322_v63 = vshrl.u32 %v321_v62, 7  ;;  %v324_v0 = vand.u32 127, %v321_v62 }
   0x3   :  { %v607_v2 = vld [vmem:[%s773_s1 + $0xb8] sm:$0xff]  ;;  %238 = vmatpush.bf16.msra.mxu1 %v599_v1  ;;  %v606_v5 = vld [vmem:[%s773_s1 + $0xb0] sm:$0xff]  ;;  %v605_v8 = vld [vmem:[%s773_s1 + $0xa8] sm:$0xff] }
   0x4   :  { %252 = vmatpush.bf16.msra.mxu2 %v607_v2  ;;  %v588_v9 = vld [vmem:[%s773_s1 + $0x20] sm:$0xff]  ;;  %v587_v12 = vld [vmem:[%s773_s1 + $0x18] sm:$0xff]  ;;  %v586_v15 = vld [vmem:[%s773_s1 + $0x10] sm:$0xff]  ;;  %vm325_vm1 = vcmp.le.s32.totalorder %v324_v0, %v322_v63 }
   0x5   :  { %v596_v10 = vld [vmem:[%s773_s1 + $0x60] sm:$0xff]  ;;  %v595_v13 = vld [vmem:[%s773_s1 + $0x58] sm:$0xff]  ;;  %v594_v16 = vld [vmem:[%s773_s1 + $0x50] sm:$0xff] }
   0x6   :  { %225 = vmatpush.bf16.msra.mxu0 %v590_v3  ;;  %v604_v11 = vld [vmem:[%s773_s1 + $0xa0] sm:$0xff]  ;;  %v603_v14 = vld [vmem:[%s773_s1 + $0x98] sm:$0xff]  ;;  %v602_v17 = vld [vmem:[%s773_s1 + $0x90] sm:$0xff] }
   0x7   :  { %239 = vmatpush.bf16.msra.mxu1 %v598_v4  ;;  %v585_v18 = vld [vmem:[%s773_s1 + $0x8] sm:$0xff]  ;;  %v584_v21 = vld [vmem:[%s773_s1] sm:$0xff]  ;;  %v471_v26 = vld [vmem:[%s774_s0 + $0xc] sm:$0xf0] }
   0x8   :  { %253 = vmatpush.bf16.msra.mxu2 %v606_v5  ;;  %v593_v19 = vld [vmem:[%s773_s1 + $0x48] sm:$0xff]  ;;  %v592_v22 = vld [vmem:[%s773_s1 + $0x40] sm:$0xff]  ;;  %v583_v29 = vld [vmem:[%s774_s0 + $0x10] sm:$0xf0] }
   0x9   :  { %v601_v20 = vld [vmem:[%s773_s1 + $0x88] sm:$0xff]  ;;  %v469_v23 = vld [vmem:[%s774_s0] sm:$0xf]  ;;  %v581_v25 = vld [vmem:[%s774_s0 + $0x4] sm:$0xf] }
   0xa   :  { %226 = vmatpush.bf16.msra.mxu0 %v589_v6  ;;  %v582_v24 = vld [vmem:[%s774_s0 + $0x8] sm:$0xf0]  ;;  %v600_v27 = vld [vmem:[%s773_s1 + $0x80] sm:$0xff]  ;;  %v477_v28 = vld [vmem:[%s774_s0 + $0x8] sm:$0xf]  ;;  %v474_v31 = vor.u32 %v581_v25, %v471_v26  ;;  %s620_s0 = smov 64  }
   0xb   :  { %240 = vmatpush.bf16.msra.mxu1 %v597_v7  ;;  %v470_v30 = vor.u32 %v582_v24, %v469_v23  ;;  %v478_v32 = vor.u32 %v583_v29, %v477_v28  ;;  %s621_s1 = smov 96  }
   0xc   :  { %254 = vmatpush.bf16.msra.mxu2 %v605_v8 }
   0xe   :  { %227 = vmatpush.bf16.msra.mxu0 %v588_v9 }
   0xf   :  { %241 = vmatpush.bf16.msra.mxu1 %v596_v10 }
  0x10   :  { %255 = vmatpush.bf16.msra.mxu2 %v604_v11 }
  0x12   :  { %228 = vmatpush.bf16.msra.mxu0 %v587_v12 }
  0x13   :  { %242 = vmatpush.bf16.msra.mxu1 %v595_v13 }
  0x14   :  { %256 = vmatpush.bf16.msra.mxu2 %v603_v14 }
  0x16   :  { %229 = vmatpush.bf16.msra.mxu0 %v586_v15 }
  0x17   :  { %243 = vmatpush.bf16.msra.mxu1 %v594_v16 }
  0x18   :  { %257 = vmatpush.bf16.msra.mxu2 %v602_v17 }
  0x1a   :  { %230 = vmatpush.bf16.msra.mxu0 %v585_v18 }
  0x1b   :  { %244 = vmatpush.bf16.msra.mxu1 %v593_v19 }
  0x1c   :  { %258 = vmatpush.bf16.msra.mxu2 %v601_v20 }
  0x1e   :  { %231 = vmatpush.bf16.msra.mxu0 %v584_v21 }
  0x1f   :  { %245 = vmatpush.bf16.msra.mxu1 %v592_v22 }
  0x20   :  { %259 = vmatpush.bf16.msra.mxu2 %v600_v27 }
  0x21   :  { %232 = vmatmul.bf16.vlgmr.msra.gmra.mxu0 %v470_v30 }
  0x22   :  { %246 = vmatmul.bf16.vlgmr.msra.gmra.mxu1 %v474_v31 }
  0x23   :  { %260 = vmatmul.bf16.vlgmr.msra.gmra.mxu2 %v478_v32 }
  0x9e   :  { %v233_v33 = vpop.f32.mrf.mxu0 }
  0x9f   :  { %v247_v34 = vpop.f32.mrf.mxu1 }
  0xa0   :  { %v248_v35 = vadd.f32 %v247_v34, %v233_v33 }
  0xa6   :  { %v261_v36 = vpop.f32.mrf.mxu2  ;;  %v235_v40 = vpop.f32.mrf.mxu0 }
  0xa7   :  { %v262_v37 = vadd.f32 %v261_v36, %v248_v35  ;;  %v249_v41 = vpop.f32.mrf.mxu1 }
  0xa8   :  { %v250_v45 = vadd.f32 %v249_v41, %v235_v40 }
  0xa9   :  { %v266_v38 = vmul.f32 0.17677669, %v262_v37  ;;  %v270_v39 = vpack.c.bf16 %v262_v37, %v262_v37 }
  0xab   :  { %v282_v42 = vsel %vm277_vm0, %v270_v39, 0  ;;  %v356_v43 = vunpack.c.l.b16 %v270_v39  ;;  %v268_v44 = vpack.c.bf16 %v266_v38, %v266_v38 }
  0xac   :  { %291 = vmatpush.bf16.xpose.msrb.mxu2 %v282_v42 }
  0xad   :  { %v357_v46 = vpack.c.b16 %v356_v43, %v356_v43  ;;  %v273_v47 = vunpack.c.l.b16 %v268_v44 }
  0xae   :  { %v263_v48 = vpop.f32.mrf.mxu2 }
  0xaf   :  { %v264_v49 = vadd.f32 %v263_v48, %v250_v45  ;;  %358 = vrot.lane.b32.xlu2 %v357_v46, %s620_s0  ;;  %v274_v50 = vpack.c.b16 %v273_v47, %v273_v47 }
  0xb1   :  { %v267_v51 = vmul.f32 0.17677669, %v264_v49  ;;  %275 = vrot.lane.b32.xlu0 %v274_v50, %s621_s1  ;;  %v271_v52 = vpack.c.bf16 %v264_v49, %v264_v49 }
  0xb3   :  { %v269_v53 = vpack.c.bf16 %v267_v51, %v267_v51  ;;  %v306_v54 = vsel %vm277_vm0, %v271_v52, 0  ;;  %v406_v57 = vunpack.c.l.b16 %v271_v52 }
  0xb4   :  { %315 = vmatpush.bf16.xpose.msra.mxu3 %v306_v54 }
  0xb5   :  { %v298_v55 = vunpack.c.l.b16 %v269_v53  ;;  %v407_v58 = vpack.c.b16 %v406_v57, %v406_v57 }
  0xb7   :  { %v299_v56 = vpack.c.b16 %v298_v55, %v298_v55 }
  0xb9   :  { %300 = vrot.lane.b32.xlu0 %v299_v56, %s621_s1 }
  0xc1   :  { %408 = vrot.lane.b32.xlu0 %v407_v58, %s620_s0 }
 0x109   :  { %v359_v59 = vpop.permute.xlu2 %358 }
 0x10a   :  { %361 = vxpose.xlu0.c.b16.start.end [1/1] (short) (narrow) %v359_v59, 32 }
 0x123   :  { %v276_v60 = vpop.permute.xlu0 %275 }
 0x124   :  { %575 = vmatmul.msk.bf16.vlgmr.msrb.gmra.mxu2 %vm277_vm0, %v276_v60 }
 0x12b   :  { %v301_v61 = vpop.permute.xlu0 %300 }
 0x12c   :  { %576 = vmatmul.msk.bf16.vlgmr.msra.gmra.mxu3 %vm277_vm0, %v301_v61 }
 0x133   :  { %v409_v19 = vpop.permute.xlu0 %408 }
 0x1a7   :  { %v293_v1 = vpop.f32.mrf.mxu2 }
 0x1a8   :  { %v328_v2 = vsel %vm325_vm1, %v293_v1, -inf }
 0x1a9   :  { %v331_v3 = vsel %vm330_vm2, %v328_v2, -inf }
 0x1aa   :  { %332 = vmax.xlane.f32.xlu1 %v331_v3 }
 0x1af   :  { %v295_v4 = vpop.f32.mrf.mxu2  ;;  %v317_v5 = vpop.f32.mrf.mxu3 }
 0x1b0   :  { %v329_v6 = vsel %vm325_vm1, %v317_v5, -inf }
 0x1b1   :  { %v334_v7 = vsel %vm330_vm2, %v329_v6, -inf }
 0x1b2   :  { %335 = vmax.xlane.f32.xlu1 %v334_v7 }
 0x1b6   :  { %v369_v28 = vpop.trf.xlu0 }
 0x1b7   :  { %v319_v8 = vpop.f32.mrf.mxu3 }
 0x1c6   :  { %v370_v31 = vpop.trf.xlu0 }
 0x21d   :  { %v333_v9 = vpop.xlane.xlu1 %332 }
 0x21e   :  { %v337_v10 = vsub.f32 %v328_v2, %v333_v9 }
 0x220   :  { %v339_v11 = vmul.f32 1.442695, %v337_v10 }
 0x222   :  { %612 = vpow2.f32 %v339_v11 }
 0x225   :  { %v336_v12 = vpop.xlane.xlu1 %335 }
 0x226   :  { %v338_v13 = vsub.f32 %v329_v6, %v336_v12 }
 0x228   :  { %v613_v14 = vpop.eup %612  ;;  %v341_v15 = vmul.f32 1.442695, %v338_v13 }
 0x229   :  { %v343_v16 = vsel %vm330_vm2, %v613_v14, 0.0 }
 0x22a   :  { %614 = vpow2.f32 %v341_v15  ;;  %344 = vadd.xlane.f32.xlu2 %v343_v16 }
 0x230   :  { %v615_v17 = vpop.eup %614 }
 0x231   :  { %v346_v18 = vsel %vm330_vm2, %v615_v17, 0.0 }
 0x232   :  { %347 = vadd.xlane.f32.xlu1 %v346_v18 }
 0x26c   :  { %411 = vxpose.xlu1.c.b16.start.end [1/1] (short) (narrow) %v409_v19, 32 }
 0x29d   :  { %v345_v20 = vpop.xlane.xlu2 %344 }
 0x29e   :  { %616 = vrcp.f32 %v345_v20 }
 0x2a4   :  { %v617_v21 = vpop.eup %616 }
 0x2a5   :  { %v348_v22 = vpop.xlane.xlu1 %347  ;;  %v351_v23 = vmul.f32 %v617_v21, %v613_v14 }
 0x2a6   :  { %618 = vrcp.f32 %v348_v22 }
 0x2a7   :  { %v353_v24 = vpack.c.bf16 %v351_v23, %v351_v23 }
 0x2a9   :  { %v384_v25 = vsel %vm330_vm2, %v353_v24, 0 }
 0x2aa   :  { %393 = vmatpush.bf16.xpose.msrb.mxu3 %v384_v25 }
 0x2ac   :  { %v619_v26 = vpop.eup %618 }
 0x2ad   :  { %v352_v27 = vmul.f32 %v619_v26, %v615_v17 }
 0x2af   :  { %v354_v29 = vpack.c.bf16 %v352_v27, %v352_v27 }
 0x2b1   :  { %v434_v30 = vsel %vm330_vm2, %v354_v29, 0  ;;  %577 = vmatmul.msk.bf16.vlgmr.msrb.gmra.mxu3 %vm330_vm2, %v369_v28 }
 0x2b2   :  { %443 = vmatpush.bf16.xpose.msrb.mxu0 %v434_v30  ;;  %608 = vmatpush.bf16.xpose.msrb.mxu1 %v434_v30 }
 0x2c1   :  { %578 = vmatmul.msk.bf16.gmra.mxu3 %vm330_vm2, %v370_v31 }
 0x318   :  { %v419_v32 = vpop.trf.xlu1 }
 0x319   :  { %579 = vmatmul.msk.bf16.vlgmr.msrb.gmra.mxu0 %vm330_vm2, %v419_v32 }
 0x328   :  { %v420_v33 = vpop.trf.xlu1 }
 0x329   :  { %580 = vmatmul.msk.bf16.vlgmr.msrb.gmra.mxu1 %vm330_vm2, %v420_v33 }
 0x334   :  { %v395_v34 = vpop.f32.mrf.mxu3 }
 0x335   :  { %455 = vst.msk [vmem:[%s775_s2] sm:$0xff] %vm330_vm2, %v395_v34 }
 0x33c   :  { %v397_v35 = vpop.f32.mrf.mxu3 }
 0x33d   :  { %456 = vst.msk [vmem:[%s775_s2 + $0x8] sm:$0xff] %vm330_vm2, %v397_v35 }
 0x344   :  { %v400_v36 = vpop.f32.mrf.mxu3 }
 0x345   :  { %457 = vst.msk [vmem:[%s775_s2 + $0x10] sm:$0xff] %vm330_vm2, %v400_v36 }
 0x34c   :  { %v402_v37 = vpop.f32.mrf.mxu3 }
 0x34d   :  { %458 = vst.msk [vmem:[%s775_s2 + $0x18] sm:$0xff] %vm330_vm2, %v402_v37 }
 0x396   :  { %v445_v38 = vpop.f32.mrf.mxu0 }
 0x397   :  { %459 = vst.msk [vmem:[%s775_s2 + $0x20] sm:$0xff] %vm330_vm2, %v445_v38 }
 0x39e   :  { %v447_v39 = vpop.f32.mrf.mxu0 }
 0x39f   :  { %460 = vst.msk [vmem:[%s775_s2 + $0x28] sm:$0xff] %vm330_vm2, %v447_v39 }
 0x3a6   :  { %v450_v40 = vpop.f32.mrf.mxu1 }
 0x3a7   :  { %461 = vst.msk [vmem:[%s775_s2 + $0x30] sm:$0xff] %vm330_vm2, %v450_v40 }
 0x3ae   :  { %v452_v41 = vpop.f32.mrf.mxu1 }
 0x3af   :  { %462 = vst.msk [vmem:[%s775_s2 + $0x38] sm:$0xff] %vm330_vm2, %v452_v41 }

</bundles_post_ra>
